<compile_context>
chip_gen: v6e
topology: v6e:2x2x1
jax: 0.10.0
libtpu: 0.0.40
codegen_flags: <defaults>
</compile_context>

<pallas_src>
import jax
import jax.numpy as jnp
from jax.experimental import pallas as pl
from jax.experimental.pallas import tpu as pltpu

OUT_DIM = 3  # number of classes


def mlp_kernel(x_ref, w1_ref, b1_ref, w2_ref, b2_ref,
               w3_ref, b3_ref, w4_ref, b4_ref, o_ref):
    x = x_ref[...]

    # L1 + ReLU
    h = jnp.dot(x, w1_ref[...], preferred_element_type=jnp.float32) + b1_ref[...]
    h = jnp.maximum(h, 0.0)

    # L2 + ReLU
    h = jnp.dot(h, w2_ref[...], preferred_element_type=jnp.float32) + b2_ref[...]
    h = jnp.maximum(h, 0.0)

    # L3 + ReLU
    h = jnp.dot(h, w3_ref[...], preferred_element_type=jnp.float32) + b3_ref[...]
    h = jnp.maximum(h, 0.0)

    # L4 (true 3-wide output — no lane padding, no mask needed)
    logits = jnp.dot(h, w4_ref[...], preferred_element_type=jnp.float32) + b4_ref[...]

    # Softmax over the feature axis (matches nn.Softmax on 2-D input, dim=1).
    m = jnp.max(logits, axis=-1, keepdims=True)
    e = jnp.exp(logits - m)
    denom = jnp.sum(e, axis=-1, keepdims=True)
    o_ref[...] = e / denom  # exact divide: rows sum to 1 within f32 rounding


def _round_up(n, m):
    return ((n + m - 1) // m) * m


def mlp_forward(x, params, *, block_b=1024, min_grid_steps=4):
    """x: [batch, 4] float32 -> [batch, 3] softmax probabilities."""
    w1, b1, w2, b2, w3, b3, w4, b4 = params
    B, in_dim = x.shape

    # Batch block: multiple of 8, no larger than the (rounded) batch.
    B8 = max(8, _round_up(B, 8))
    block_b = min(block_b, B8)
    # Keep >= min_grid_steps grid steps when the batch allows, so the
    # "parallel" batch axis can shard across both TensorCores on v7x.
    per_step = max(8, _round_up(pl.cdiv(B8, min_grid_steps), 8))
    block_b = max(8, min(block_b, per_step))

    Bp = _round_up(B8, block_b)
    if Bp != B:
        x = jnp.pad(x, ((0, Bp - B), (0, 0)))

    grid = (Bp // block_b,)

    # Weights / biases: constant index_map -> DMA'd once, VMEM-resident
    # across the whole batch grid.
    const = lambda a: pl.BlockSpec(a.shape, lambda i: (0,) * a.ndim)

    out = pl.pallas_call(
        mlp_kernel,
        out_shape=jax.ShapeDtypeStruct((Bp, OUT_DIM), jnp.float32),
        grid_spec=pltpu.PrefetchScalarGridSpec(
            num_scalar_prefetch=0,
            grid=grid,
            in_specs=[
                pl.BlockSpec((block_b, in_dim), lambda i: (i, 0)),
                const(w1), const(b1),
                const(w2), const(b2),
                const(w3), const(b3),
                const(w4), const(b4),
            ],
            out_specs=pl.BlockSpec((block_b, OUT_DIM), lambda i: (i, 0)),
        ),
        compiler_params=pltpu.CompilerParams(
            dimension_semantics=("parallel",)),
    )(x, w1, b1, w2, b2, w3, b3, w4, b4)

    return out[:B]


def init_params(key):
    """Deterministic parameter init (PyTorch-style uniform bounds)."""
    dims = [(4, 32), (32, 16), (16, 8), (8, 3)]
    params = []
    keys = jax.random.split(key, 2 * len(dims))
    for idx, (fan_in, fan_out) in enumerate(dims):
        bound = 1.0 / (fan_in ** 0.5)
        w = jax.random.uniform(keys[2 * idx], (fan_in, fan_out),
                               jnp.float32, -bound, bound)
        b = jax.random.uniform(keys[2 * idx + 1], (1, fan_out),
                               jnp.float32, -bound, bound)
        params += [w, b]
    return tuple(params)


def reference(x, params):
    w1, b1, w2, b2, w3, b3, w4, b4 = params
    h = jnp.maximum(x @ w1 + b1, 0.0)
    h = jnp.maximum(h @ w2 + b2, 0.0)
    h = jnp.maximum(h @ w3 + b3, 0.0)
    return jax.nn.softmax(h @ w4 + b4, axis=-1)


if __name__ == "__main__":
    key = jax.random.PRNGKey(0)
    k_x, k_p = jax.random.split(key)
    params = init_params(k_p)

    # batch=8 exercises the tiny single-block path; batch=1000 exercises the
    # multi-block grid (block 256 after the >=4-step clamp) plus row padding.
    for batch in (8, 1000):
        x = jax.random.normal(jax.random.fold_in(k_x, batch),
                              (batch, 4), dtype=jnp.float32)
        out = jax.block_until_ready(mlp_forward(x, params))
        ref = reference(x, params)
        assert out.shape == (batch, OUT_DIM)
        assert jnp.allclose(out, ref, atol=1e-3, rtol=1e-3), \
            float(jnp.max(jnp.abs(out - ref)))
        # Exact divide in the softmax -> rows sum to 1 within f32 rounding.
        assert jnp.allclose(jnp.sum(out, axis=-1), 1.0, atol=1e-4)

    print("KERNEL_OK")
</pallas_src>

<mosaic_0001>
module attributes {stable_mosaic.version = 11 : i64} {
  func.func @mlp_kernel(%arg0: i32, %arg1: memref<8x4xf32, #tpu.memory_space<vmem>>, %arg2: memref<4x32xf32, #tpu.memory_space<vmem>>, %arg3: memref<1x32xf32, #tpu.memory_space<vmem>>, %arg4: memref<32x16xf32, #tpu.memory_space<vmem>>, %arg5: memref<1x16xf32, #tpu.memory_space<vmem>>, %arg6: memref<16x8xf32, #tpu.memory_space<vmem>>, %arg7: memref<1x8xf32, #tpu.memory_space<vmem>>, %arg8: memref<8x3xf32, #tpu.memory_space<vmem>>, %arg9: memref<1x3xf32, #tpu.memory_space<vmem>>, %arg10: memref<8x3xf32, #tpu.memory_space<vmem>>) attributes {dimension_semantics = [#tpu.dimension_semantics<parallel>], iteration_bounds = array<i64: 1>, scalar_prefetch = 0 : i64, scratch_operands = 0 : i64, tpu.core_type = #tpu.core_type<tc>, window_params = [{transform_indices = @transform_0, window_bounds = array<i64: 8, 4>}, {pipeline_mode = #tpu.pipeline_mode<synchronous>, transform_indices = @transform_1, window_bounds = array<i64: 4, 32>}, {pipeline_mode = #tpu.pipeline_mode<synchronous>, transform_indices = @transform_2, window_bounds = array<i64: 1, 32>}, {pipeline_mode = #tpu.pipeline_mode<synchronous>, transform_indices = @transform_3, window_bounds = array<i64: 32, 16>}, {pipeline_mode = #tpu.pipeline_mode<synchronous>, transform_indices = @transform_4, window_bounds = array<i64: 1, 16>}, {pipeline_mode = #tpu.pipeline_mode<synchronous>, transform_indices = @transform_5, window_bounds = array<i64: 16, 8>}, {pipeline_mode = #tpu.pipeline_mode<synchronous>, transform_indices = @transform_6, window_bounds = array<i64: 1, 8>}, {pipeline_mode = #tpu.pipeline_mode<synchronous>, transform_indices = @transform_7, window_bounds = array<i64: 8, 3>}, {pipeline_mode = #tpu.pipeline_mode<synchronous>, transform_indices = @transform_8, window_bounds = array<i64: 1, 3>}, {transform_indices = @transform_9, window_bounds = array<i64: 8, 3>}]} {
    %c0 = arith.constant 0 : index
    %c0_0 = arith.constant 0 : index
    %0 = vector.load %arg1[%c0, %c0_0] : memref<8x4xf32, #tpu.memory_space<vmem>>, vector<8x4xf32>
    %c0_1 = arith.constant 0 : index
    %c0_2 = arith.constant 0 : index
    %1 = vector.load %arg2[%c0_1, %c0_2] : memref<4x32xf32, #tpu.memory_space<vmem>>, vector<4x32xf32>
    %cst = arith.constant dense<0.000000e+00> : vector<8x32xf32>
    %2 = tpu.matmul %0, %1, %cst {dimension_numbers = #tpu.dot_dimension_numbers<[1], [0], [0], [1], [0, 0, 1, 1], [], []>} : vector<8x4xf32>, vector<4x32xf32>, vector<8x32xf32> -> vector<8x32xf32>
    %c0_3 = arith.constant 0 : index
    %c0_4 = arith.constant 0 : index
    %3 = vector.load %arg3[%c0_3, %c0_4] : memref<1x32xf32, #tpu.memory_space<vmem>>, vector<1x32xf32>
    %4 = vector.broadcast %3 : vector<1x32xf32> to vector<8x32xf32>
    %5 = arith.addf %2, %4 : vector<8x32xf32>
    %cst_5 = arith.constant 0.000000e+00 : f32
    %6 = vector.broadcast %cst_5 : f32 to vector<8x32xf32>
    %7 = arith.maximumf %5, %6 : vector<8x32xf32>
    %c0_6 = arith.constant 0 : index
    %c0_7 = arith.constant 0 : index
    %8 = vector.load %arg4[%c0_6, %c0_7] : memref<32x16xf32, #tpu.memory_space<vmem>>, vector<32x16xf32>
    %cst_8 = arith.constant dense<0.000000e+00> : vector<8x16xf32>
    %9 = tpu.matmul %7, %8, %cst_8 {dimension_numbers = #tpu.dot_dimension_numbers<[1], [0], [0], [1], [0, 0, 1, 1], [], []>} : vector<8x32xf32>, vector<32x16xf32>, vector<8x16xf32> -> vector<8x16xf32>
    %c0_9 = arith.constant 0 : index
    %c0_10 = arith.constant 0 : index
    %10 = vector.load %arg5[%c0_9, %c0_10] : memref<1x16xf32, #tpu.memory_space<vmem>>, vector<1x16xf32>
    %11 = vector.broadcast %10 : vector<1x16xf32> to vector<8x16xf32>
    %12 = arith.addf %9, %11 : vector<8x16xf32>
    %cst_11 = arith.constant 0.000000e+00 : f32
    %13 = vector.broadcast %cst_11 : f32 to vector<8x16xf32>
    %14 = arith.maximumf %12, %13 : vector<8x16xf32>
    %c0_12 = arith.constant 0 : index
    %c0_13 = arith.constant 0 : index
    %15 = vector.load %arg6[%c0_12, %c0_13] : memref<16x8xf32, #tpu.memory_space<vmem>>, vector<16x8xf32>
    %cst_14 = arith.constant dense<0.000000e+00> : vector<8x8xf32>
    %16 = tpu.matmul %14, %15, %cst_14 {dimension_numbers = #tpu.dot_dimension_numbers<[1], [0], [0], [1], [0, 0, 1, 1], [], []>} : vector<8x16xf32>, vector<16x8xf32>, vector<8x8xf32> -> vector<8x8xf32>
    %c0_15 = arith.constant 0 : index
    %c0_16 = arith.constant 0 : index
    %17 = vector.load %arg7[%c0_15, %c0_16] : memref<1x8xf32, #tpu.memory_space<vmem>>, vector<1x8xf32>
    %18 = vector.broadcast %17 : vector<1x8xf32> to vector<8x8xf32>
    %19 = arith.addf %16, %18 : vector<8x8xf32>
    %cst_17 = arith.constant 0.000000e+00 : f32
    %20 = vector.broadcast %cst_17 : f32 to vector<8x8xf32>
    %21 = arith.maximumf %19, %20 : vector<8x8xf32>
    %c0_18 = arith.constant 0 : index
    %c0_19 = arith.constant 0 : index
    %22 = vector.load %arg8[%c0_18, %c0_19] : memref<8x3xf32, #tpu.memory_space<vmem>>, vector<8x3xf32>
    %cst_20 = arith.constant dense<0.000000e+00> : vector<8x3xf32>
    %23 = tpu.matmul %21, %22, %cst_20 {dimension_numbers = #tpu.dot_dimension_numbers<[1], [0], [0], [1], [0, 0, 1, 1], [], []>} : vector<8x8xf32>, vector<8x3xf32>, vector<8x3xf32> -> vector<8x3xf32>
    %c0_21 = arith.constant 0 : index
    %c0_22 = arith.constant 0 : index
    %24 = vector.load %arg9[%c0_21, %c0_22] : memref<1x3xf32, #tpu.memory_space<vmem>>, vector<1x3xf32>
    %25 = vector.broadcast %24 : vector<1x3xf32> to vector<8x3xf32>
    %26 = arith.addf %23, %25 : vector<8x3xf32>
    %cst_23 = arith.constant dense<0xFF800000> : vector<8xf32>
    %27 = vector.multi_reduction <maximumf>, %26, %cst_23 [1] : vector<8x3xf32> to vector<8xf32>
    %28 = vector.shape_cast %27 : vector<8xf32> to vector<8x1xf32>
    %29 = vector.broadcast %28 : vector<8x1xf32> to vector<8x3xf32>
    %30 = arith.subf %26, %29 : vector<8x3xf32>
    %31 = math.exp %30 : vector<8x3xf32>
    %cst_24 = arith.constant dense<0.000000e+00> : vector<8xf32>
    %32 = vector.multi_reduction <add>, %31, %cst_24 [1] : vector<8x3xf32> to vector<8xf32>
    %33 = vector.shape_cast %32 : vector<8xf32> to vector<8x1xf32>
    %34 = vector.broadcast %33 : vector<8x1xf32> to vector<8x3xf32>
    %35 = arith.divf %31, %34 : vector<8x3xf32>
    %c0_25 = arith.constant 0 : index
    %c0_26 = arith.constant 0 : index
    %36 = vector.load %arg10[%c0_25, %c0_26] : memref<8x3xf32, #tpu.memory_space<vmem>>, vector<8x3xf32>
    tpu.vector_store %arg10[%c0_25, %c0_26], %35 {strides = array<i32>} : memref<8x3xf32, #tpu.memory_space<vmem>>, vector<8x3xf32>,
    return
  }
  func.func @transform_0(%arg0: i32) -> (i32, i32) {
    %c0_i32 = arith.constant 0 : i32
    %c0_i32_0 = arith.constant 0 : i32
    return %arg0, %c0_i32 : i32, i32
  }
  func.func @transform_1(%arg0: i32) -> (i32, i32) {
    %c0_i32 = arith.constant 0 : i32
    %c0_i32_0 = arith.constant 0 : i32
    %c0_i32_1 = arith.constant 0 : i32
    return %c0_i32, %c0_i32_0 : i32, i32
  }
  func.func @transform_2(%arg0: i32) -> (i32, i32) {
    %c0_i32 = arith.constant 0 : i32
    %c0_i32_0 = arith.constant 0 : i32
    %c0_i32_1 = arith.constant 0 : i32
    return %c0_i32, %c0_i32_0 : i32, i32
  }
  func.func @transform_3(%arg0: i32) -> (i32, i32) {
    %c0_i32 = arith.constant 0 : i32
    %c0_i32_0 = arith.constant 0 : i32
    %c0_i32_1 = arith.constant 0 : i32
    return %c0_i32, %c0_i32_0 : i32, i32
  }
  func.func @transform_4(%arg0: i32) -> (i32, i32) {
    %c0_i32 = arith.constant 0 : i32
    %c0_i32_0 = arith.constant 0 : i32
    %c0_i32_1 = arith.constant 0 : i32
    return %c0_i32, %c0_i32_0 : i32, i32
  }
  func.func @transform_5(%arg0: i32) -> (i32, i32) {
    %c0_i32 = arith.constant 0 : i32
    %c0_i32_0 = arith.constant 0 : i32
    %c0_i32_1 = arith.constant 0 : i32
    return %c0_i32, %c0_i32_0 : i32, i32
  }
  func.func @transform_6(%arg0: i32) -> (i32, i32) {
    %c0_i32 = arith.constant 0 : i32
    %c0_i32_0 = arith.constant 0 : i32
    %c0_i32_1 = arith.constant 0 : i32
    return %c0_i32, %c0_i32_0 : i32, i32
  }
  func.func @transform_7(%arg0: i32) -> (i32, i32) {
    %c0_i32 = arith.constant 0 : i32
    %c0_i32_0 = arith.constant 0 : i32
    %c0_i32_1 = arith.constant 0 : i32
    return %c0_i32, %c0_i32_0 : i32, i32
  }
  func.func @transform_8(%arg0: i32) -> (i32, i32) {
    %c0_i32 = arith.constant 0 : i32
    %c0_i32_0 = arith.constant 0 : i32
    %c0_i32_1 = arith.constant 0 : i32
    return %c0_i32, %c0_i32_0 : i32, i32
  }
  func.func @transform_9(%arg0: i32) -> (i32, i32) {
    %c0_i32 = arith.constant 0 : i32
    %c0_i32_0 = arith.constant 0 : i32
    return %arg0, %c0_i32 : i32, i32
  }
}

</mosaic_0001>

<bundles_post_ra>
// kernel: tpu_custom_call.1
= control target key start
LH: loop header
LB: loop body
LE: loop exit
PB: predicated region body
PF: predicated region fallthrough
CT: control target
= control target key end

     0   :  { %vm45_vm0 = vcmask 1043456   ;;  %vm41_vm1 = vcmask 31744   ;;  %v444_v0 = vmov 0.0   ;;  %vm445_vm2 = vmmov 0   ;;  %s545_s1 = inlined_call_operand.vmem [shape: f32[4,32], index: 1, kind: input, shape index: {}]   ;;  %s546_s0 = inlined_call_operand.vmem [shape: f32[8,4], index: 0, kind: input, shape index: {}]   ;;  %s547_s3 = inlined_call_operand.vmem [shape: f32[32,16], index: 3, kind: input, shape index: {}]   ;;  %s548_s2 = inlined_call_operand.vmem [shape: f32[1,32], index: 2, kind: input, shape index: {}]   ;;  %s549_s5 = inlined_call_operand.vmem [shape: f32[16,8], index: 5, kind: input, shape index: {}]   ;;  %s550_s4 = inlined_call_operand.vmem [shape: f32[1,16], index: 4, kind: input, shape index: {}]   ;;  %s551_s7 = inlined_call_operand.vmem [shape: f32[8,3], index: 7, kind: input, shape index: {}]   ;;  %s552_s6 = inlined_call_operand.vmem [shape: f32[1,8], index: 6, kind: input, shape index: {}]   ;;  %s553_s8 = inlined_call_operand.vmem [shape: f32[1,3], index: 8, kind: input, shape index: {}]   ;;  %s554_s9 = inlined_call_operand.vmem [shape: f32[8,3], index: 9, kind: output, shape index: {}]  }
   0x1   :  { %410 = vmatprep.subr.mxu0 %v444_v0  ;;  %v33_v1 = vld [vmem:[%s545_s1] sm:$0xf]  ;;  %412 = vmatprep.mubr.msk.f32.mxu0 %vm445_vm2, %v444_v0  ;;  %v123_v3 = vld [vmem:[%s547_s3 + $0x18] sm:$0xff]  ;;  %v122_v4 = vld [vmem:[%s547_s3 + $0x10] sm:$0xff]  ;;  %vm131_vm3 = vcmask 261120   ;;  %vm215_vm4 = vcmask 130048  }
   0x2   :  { %v32_v2 = vld [vmem:[%s546_s0] sm:$0xff]  ;;  %411 = vmatpush3.msk.msra.mxu0 %vm45_vm0, %v33_v1  ;;  %415 = vmatprep.subr.mxu1 %v444_v0  ;;  %v121_v5 = vld [vmem:[%s547_s3 + $0x8] sm:$0xff]  ;;  %vm298_vm5 = vcmask 64512   ;;  %vm372_vm6 = vcmask 23552  }
   0x3   :  { %413 = vmatmul.mubr.msk.f32.vlgmr.msra.gmra.mxu0 %vm41_vm1, %v32_v2  ;;  %416 = vmatpush3.msra.mxu1 %v123_v3  ;;  %v120_v6 = vld [vmem:[%s547_s3] sm:$0xff]  ;;  %v207_v12 = vld [vmem:[%s549_s5 + $0x8] sm:$0xff] }
   0x4   :  { %417 = vmatprep.subr.mxu1 %v444_v0  ;;  %423 = vmatprep.mubr.msk.f32.mxu1 %vm445_vm2, %v444_v0  ;;  %v389_v7 = vld [vmem:[%s548_s2] ss:$0 sm:$0xff] }
   0x5   :  { %426 = vmatprep.subr.mxu0 %v444_v0  ;;  %430 = vmatprep.mubr.msk.f32.mxu0 %vm445_vm2, %v444_v0  ;;  %v206_v13 = vld [vmem:[%s549_s5] sm:$0xff] }
   0x6   :  { %418 = vmatpush3.msra.mxu1 %v122_v4  ;;  %427 = vmatpush3.msra.mxu0 %v207_v12  ;;  %v392_v14 = vld [vmem:[%s550_s4] ss:$0 sm:$0xff] }
   0x7   :  { %419 = vmatprep.subr.mxu1 %v444_v0  ;;  %428 = vmatprep.subr.mxu0 %v444_v0  ;;  %v290_v19 = vld [vmem:[%s551_s7] sm:$0xff] }
   0x8   :  { %420 = vmatpush3.msra.mxu1 %v121_v5  ;;  %429 = vmatpush3.msra.mxu0 %v206_v13  ;;  %v394_v20 = vld [vmem:[%s552_s6] ss:$0 sm:$0xff] }
   0x9   :  { %421 = vmatprep.subr.mxu1 %v444_v0  ;;  %433 = vmatprep.subr.mxu0 %v444_v0  ;;  %v396_v25 = vld [vmem:[%s553_s8] ss:$0 sm:$0xff] }
   0xa   :  { %422 = vmatpush3.msra.mxu1 %v120_v6 }
  0xc3   :  { %v115_v8 = vpop.f32.mrf.mxu0 }
  0xc4   :  { %v116_v9 = vadd.f32 %v389_v7, %v115_v8 }
  0xc5   :  { %v414_v10 = vpop.f32.mrf.mxu0 }
  0xc6   :  { %v119_v11 = vmax.f32 %v116_v9, 0.0 }
  0xc8   :  { %424 = vmatmul.mubr.msk.f32.vlgmr.msra.gmra.mxu1 %vm131_vm3, %v119_v11 }
 0x188   :  { %v201_v15 = vpop.f32.mrf.mxu1 }
 0x189   :  { %v202_v16 = vadd.f32 %v392_v14, %v201_v15 }
 0x18a   :  { %v425_v17 = vpop.f32.mrf.mxu1 }
 0x18b   :  { %v205_v18 = vmax.f32 %v202_v16, 0.0 }
 0x18d   :  { %431 = vmatmul.mubr.msk.f32.vlgmr.msra.gmra.mxu0 %vm215_vm4, %v205_v18 }
 0x18e   :  { %435 = vmatprep.mubr.msk.f32.mxu0 %vm445_vm2, %v444_v0  ;;  %434 = vmatpush3.msra.mxu0 %v290_v19 }
 0x24d   :  { %v285_v21 = vpop.f32.mrf.mxu0 }
 0x24e   :  { %v286_v22 = vadd.f32 %v394_v20, %v285_v21 }
 0x24f   :  { %v432_v23 = vpop.f32.mrf.mxu0 }
 0x250   :  { %v289_v24 = vmax.f32 %v286_v22, 0.0 }
 0x252   :  { %436 = vmatmul.mubr.msk.f32.vlgmr.msra.gmra.mxu0 %vm298_vm5, %v289_v24 }
 0x312   :  { %v368_v26 = vpop.f32.mrf.mxu0 }
 0x313   :  { %v369_v27 = vadd.f32 %v396_v25, %v368_v26 }
 0x314   :  { %v437_v28 = vpop.f32.mrf.mxu0 }
 0x315   :  { %v373_v29 = vsel %vm372_vm6, %v369_v27, -inf }
 0x316   :  { %374 = vmax.xlane.f32.xlu0 %v373_v29 }
 0x39f   :  { %v375_v30 = vpop.xlane.xlu0 %374 }
 0x3a0   :  { %v376_v31 = vsub.f32 %v369_v27, %v375_v30 }
 0x3a2   :  { %v377_v32 = vmul.f32 1.442695, %v376_v31 }
 0x3a4   :  { %440 = vpow2.f32 %v377_v32 }
 0x3b1   :  { %v441_v33 = vpop.eup %440 }
 0x3b2   :  { %v379_v34 = vsel %vm372_vm6, %v441_v33, 0.0 }
 0x3b3   :  { %380 = vadd.xlane.f32.xlu0 %v379_v34 }
 0x43c   :  { %v381_v35 = vpop.xlane.xlu0 %380 }
 0x43d   :  { %442 = vrcp.f32 %v381_v35 }
 0x44a   :  { %v443_v36 = vpop.eup %442 }
 0x44b   :  { %v383_v37 = vmul.f32 %v443_v36, %v441_v33 }
 0x44d   :  { %384 = vst.msk [vmem:[%s554_s9] sm:$0xff] %vm372_vm6, %v383_v37 }

</bundles_post_ra>
